<compile_context>
chip_gen: v7x
topology: tpu7x:2x2x1
jax: 0.10.0
libtpu: 0.0.40
codegen_flags: <defaults>
</compile_context>

<pallas_src>
import functools

import jax
import jax.numpy as jnp
from jax.experimental import pallas as pl
from jax.experimental.pallas import tpu as pltpu


def _round_up(x, m):
    return (x + m - 1) // m * m


def _patch_embed_kernel(x_ref, w_ref, b_ref, o_ref):
    # x_ref: (tm, K) compute dtype; w_ref: (K, E) compute dtype;
    # b_ref: (1, E) f32; o_ref: (tm, E) out dtype.
    acc = jnp.dot(x_ref[...], w_ref[...], preferred_element_type=jnp.float32)
    o_ref[...] = (acc + b_ref[...]).astype(o_ref.dtype)


def _pick_tile_m(M, tile_m):
    """Rows per grid step: a multiple of 8 (or == M), targeting an even grid
    of >= 4 steps so the DMA pipeline and v7x's 2 TCs both have work."""
    assert tile_m % 8 == 0, "tile_m must be a multiple of 8"
    if M <= 8:
        return M
    steps = max(pl.cdiv(M, tile_m), min(4, pl.cdiv(M, 8)))
    if steps > 1 and steps % 2:
        steps += 1                       # even step count -> even 2-TC split
    return min(_round_up(pl.cdiv(M, steps), 8), M)


def patch_embedding_forward(im, weight, bias, patch_size, *,
                            tile_m=512, compute_dtype=jnp.bfloat16,
                            out_dtype=None):
    """im:     [B, C, H, W]          (NCHW, like PyTorch)
       weight: [E, C, P, P]          (nn.Conv2d weight layout)
       bias:   [E]
       returns [B, num_patches, E] == proj(im).flatten(2).transpose(1, 2)
    """
    B, C, H, W = im.shape
    E = weight.shape[0]
    P = patch_size
    assert H % P == 0 and W % P == 0, "image dims must be divisible by patch size"
    Hp, Wp = H // P, W // P
    N = Hp * Wp
    K = C * P * P
    M = B * N
    if out_dtype is None:
        out_dtype = im.dtype

    # --- glue: patch extraction (reshape/transpose only) --------------------
    # Cast to compute_dtype *before* the transpose; allow_input_fusion below
    # lets XLA fold the whole chain into the kernel's input DMA.
    x = im.astype(compute_dtype).reshape(B, C, Hp, P, Wp, P)
    x = x.transpose(0, 2, 4, 1, 3, 5).reshape(M, K)

    # Conv2d weight [E, C, P, P] -> [K, E] (same (c, ph, pw) flatten order).
    # TODO(synk): in a real model, store the projection pre-transposed so this
    # constant-folds instead of running per call.
    w = weight.reshape(E, K).T.astype(compute_dtype)
    b = bias.astype(jnp.float32).reshape(1, E)

    tm = _pick_tile_m(M, tile_m)

    cb = jnp.dtype(compute_dtype).itemsize
    ob = jnp.dtype(out_dtype).itemsize
    cost = pl.CostEstimate(
        flops=2 * M * K * E,
        transcendentals=0,
        bytes_accessed=M * K * cb + K * E * cb + M * E * ob + E * 4,
    )
    # Double-buffered x/out, single-buffered weight/bias, 2x headroom,
    # clamped to [16 MiB, 48 MiB] (safe on v5e/v6e/v7x).
    vmem_need = 2 * tm * K * cb + 2 * tm * E * ob + K * E * cb + 4 * E
    vmem_limit = int(min(max(2 * vmem_need, 16 << 20), 48 << 20))

    out = pl.pallas_call(
        _patch_embed_kernel,
        out_shape=jax.ShapeDtypeStruct((M, E), out_dtype),
        grid_spec=pltpu.PrefetchScalarGridSpec(
            num_scalar_prefetch=0,
            grid=(pl.cdiv(M, tm),),
            in_specs=[
                # streamed patch rows (double-buffered by default)
                pl.BlockSpec((tm, K), lambda i: (i, 0)),
                # VMEM-resident weight: constant index_map + single buffer
                pl.BlockSpec((K, E), lambda i: (0, 0),
                             pipeline_mode=pl.Buffered(1)),
                # VMEM-resident bias
                pl.BlockSpec((1, E), lambda i: (0, 0),
                             pipeline_mode=pl.Buffered(1)),
            ],
            out_specs=pl.BlockSpec((tm, E), lambda i: (i, 0)),
        ),
        compiler_params=pltpu.CompilerParams(
            dimension_semantics=("parallel",),           # megacore on v7x
            allow_input_fusion=[True, False, False],     # fuse patch extract
            vmem_limit_bytes=vmem_limit,
        ),
        cost_estimate=cost,
    )(x, w, b)

    return out.reshape(B, N, E)


if __name__ == "__main__":
    # Small shapes consistent with the module:
    #   image_size=(16, 16), patch_size=4, embed_dim=32, channels=4, batch=2
    B, C, H, W = 2, 4, 16, 16
    P = 4
    E = 32

    key = jax.random.PRNGKey(0)
    k_im, k_w, k_b = jax.random.split(key, 3)
    im = jax.random.normal(k_im, (B, C, H, W), dtype=jnp.float32)
    weight = jax.random.normal(k_w, (E, C, P, P), dtype=jnp.float32) * 0.02
    bias = jax.random.normal(k_b, (E,), dtype=jnp.float32) * 0.02

    # Reference (same semantics as PyTorch Conv2d + flatten(2).transpose(1,2))
    ref = jax.lax.conv_general_dilated(
        im, weight, window_strides=(P, P), padding="VALID",
        dimension_numbers=("NCHW", "OIHW", "NCHW"))
    ref = (ref + bias.reshape(1, E, 1, 1)).reshape(B, E, -1).transpose(0, 2, 1)

    N = (H // P) * (W // P)

    # Production path: bf16 MXU inputs + bf16 output (min HBM traffic).
    # Default tile picker already yields a 4-step pipelined grid here (M=32).
    fwd_bf16 = jax.jit(functools.partial(
        patch_embedding_forward, patch_size=P, out_dtype=jnp.bfloat16))
    out_bf16 = jax.block_until_ready(fwd_bf16(im, weight, bias))
    assert out_bf16.shape == (B, N, E)
    assert out_bf16.dtype == jnp.bfloat16
    assert jnp.allclose(out_bf16.astype(jnp.float32), ref, atol=1e-2, rtol=5e-2)

    # f32 compute / f32 output path for a tight numerical check.
    fwd_f32 = jax.jit(functools.partial(
        patch_embedding_forward, patch_size=P, compute_dtype=jnp.float32))
    out_f32 = jax.block_until_ready(fwd_f32(im, weight, bias))
    assert out_f32.shape == (B, N, E)
    assert out_f32.dtype == im.dtype
    assert jnp.allclose(out_f32, ref, atol=1e-4, rtol=1e-4)

    print("KERNEL_OK")
</pallas_src>

<mosaic_0001>
module attributes {stable_mosaic.version = 11 : i64} {
  func.func @_patch_embed_kernel(%arg0: i32, %arg1: memref<8x64xbf16, #tpu.memory_space<vmem>>, %arg2: memref<64x32xbf16, #tpu.memory_space<vmem>>, %arg3: memref<1x32xf32, #tpu.memory_space<vmem>>, %arg4: memref<8x32xbf16, #tpu.memory_space<vmem>>) attributes {dimension_semantics = [#tpu.dimension_semantics<parallel>], iteration_bounds = array<i64: 4>, scalar_prefetch = 0 : i64, scratch_operands = 0 : i64, tpu.core_type = #tpu.core_type<tc>, window_params = [{transform_indices = @transform_0, window_bounds = array<i64: 8, 64>}, {pipeline_mode = #tpu.pipeline_mode<synchronous>, transform_indices = @transform_1, window_bounds = array<i64: 64, 32>}, {pipeline_mode = #tpu.pipeline_mode<synchronous>, transform_indices = @transform_2, window_bounds = array<i64: 1, 32>}, {transform_indices = @transform_3, window_bounds = array<i64: 8, 32>}]} {
    %c0 = arith.constant 0 : index
    %c0_0 = arith.constant 0 : index
    %0 = vector.load %arg1[%c0, %c0_0] : memref<8x64xbf16, #tpu.memory_space<vmem>>, vector<8x64xbf16>
    %c0_1 = arith.constant 0 : index
    %c0_2 = arith.constant 0 : index
    %1 = vector.load %arg2[%c0_1, %c0_2] : memref<64x32xbf16, #tpu.memory_space<vmem>>, vector<64x32xbf16>
    %cst = arith.constant dense<0.000000e+00> : vector<8x32xf32>
    %2 = tpu.matmul %0, %1, %cst {dimension_numbers = #tpu.dot_dimension_numbers<[1], [0], [0], [1], [0, 0, 1, 1], [], []>} : vector<8x64xbf16>, vector<64x32xbf16>, vector<8x32xf32> -> vector<8x32xf32>
    %c0_3 = arith.constant 0 : index
    %c0_4 = arith.constant 0 : index
    %3 = vector.load %arg3[%c0_3, %c0_4] : memref<1x32xf32, #tpu.memory_space<vmem>>, vector<1x32xf32>
    %4 = vector.broadcast %3 : vector<1x32xf32> to vector<8x32xf32>
    %5 = arith.addf %2, %4 : vector<8x32xf32>
    %6 = arith.truncf %5 : vector<8x32xf32> to vector<8x32xbf16>
    %c0_5 = arith.constant 0 : index
    %c0_6 = arith.constant 0 : index
    %7 = vector.load %arg4[%c0_5, %c0_6] : memref<8x32xbf16, #tpu.memory_space<vmem>>, vector<8x32xbf16>
    tpu.vector_store %arg4[%c0_5, %c0_6], %6 {strides = array<i32>} : memref<8x32xbf16, #tpu.memory_space<vmem>>, vector<8x32xbf16>,
    return
  }
  func.func @transform_0(%arg0: i32) -> (i32, i32) {
    %c0_i32 = arith.constant 0 : i32
    %c0_i32_0 = arith.constant 0 : i32
    return %arg0, %c0_i32 : i32, i32
  }
  func.func @transform_1(%arg0: i32) -> (i32, i32) {
    %c0_i32 = arith.constant 0 : i32
    %c0_i32_0 = arith.constant 0 : i32
    %c0_i32_1 = arith.constant 0 : i32
    return %c0_i32, %c0_i32_0 : i32, i32
  }
  func.func @transform_2(%arg0: i32) -> (i32, i32) {
    %c0_i32 = arith.constant 0 : i32
    %c0_i32_0 = arith.constant 0 : i32
    %c0_i32_1 = arith.constant 0 : i32
    return %c0_i32, %c0_i32_0 : i32, i32
  }
  func.func @transform_3(%arg0: i32) -> (i32, i32) {
    %c0_i32 = arith.constant 0 : i32
    %c0_i32_0 = arith.constant 0 : i32
    return %arg0, %c0_i32 : i32, i32
  }
}

</mosaic_0001>

<bundles_post_ra>
// kernel: patch_embedding_forward.1
= control target key start
LH: loop header
LB: loop body
LE: loop exit
PB: predicated region body
PF: predicated region fallthrough
CT: control target
= control target key end

     0   :  { %8 = vsyncpa [#allocation3], 0  ;;  %s607_s0 = inlined_call_operand.vmem [shape: bf16[32,64], index: 0, kind: input, shape index: {}]   ;;  %s608_s1 = inlined_call_operand.vmem [shape: bf16[64,32], index: 1, kind: input, shape index: {}]   ;;  %s609_s2 = inlined_call_operand.vmem [shape: f32[1,32], index: 2, kind: input, shape index: {}]   ;;  %s610_s3 = inlined_call_operand.hbm [shape: bf16[32,32], index: 3, kind: output, shape index: {}]  }
   0x1   :  { %10 = vsyncpa [#allocation3 + $0x1], 0  ;;  %s492_s12 = smov 0   ;;  %s494_s13 = smov 0  }
   0x2   :  { %s496_s14 = smov 0   ;;  %s498_s15 = smov 0  }
   0x3 LB: > { %s513_s16 = sadd.s32 4294967295, %s467_s15   ;;  %s327_s17 = sadd.s32 4294967294, %s467_s15   ;;  %s467_s15 = sphi %s498_s15, %s616_s15   ;;  %s463_s14 = sphi %s496_s14, %s615_s14   ;;  %s459_s13 = sphi %s494_s13, %s614_s13   ;;  %s455_s12 = sphi %s492_s12, %s613_s12  }
   0x4   : > { %s517_s18 = sadd.s32 1, %s467_s15   ;;  %s91_s19 = sadd.s32 1, %s463_s14 }
   0x5   : > { %s88_s20 = ssub.s32 %s467_s15, %s517_s18  ;;  %p101_p0 = scmp.ne.s32.totalorder %s463_s14, %s459_s13 }
   0x6   : > { %p89_p1 = scmp.eq.s32.totalorder %s88_s20, 0  ;;  %p102_p2 = scmp.eq.s32.totalorder %s513_s16, 3 }
   0x7   : > { %p107_p3 = scmp.ne.s32.totalorder %s459_s13, %s455_s12  ;;  %p108_p4 = scmp.eq.s32.totalorder %s327_s17, 3 }
   0x8   : > { %s528_s21 = scalar_select %p89_p1, %s463_s14, %s91_s19  }
   0x9   : > { %p530_p5 = por %p102_p2, %p101_p0  ;;  %p534_p6 = por %p108_p4, %p107_p3 }
   0xa   : > { %p330_p7 = scmp.ge.s32.totalorder %s467_s15, 1  ;;  %p139_p8 = scmp.lt.s32.totalorder %s467_s15, 5 }
   0xc   : > { %p140_p9 = pnand %p330_p7, %p139_p8 }
   0xd   : > { %v401_v0 = vld [vmem:[%s608_s1] sm:$0xff] (!%p140_p9)   ;;  %v469_v1 = vmov (!%p140_p9), 0.0   ;;  %v402_v2 = vld [vmem:[%s608_s1 + $0x8] sm:$0xff] (!%p140_p9)   ;;  %vm470_vm0 = vmmov (!%p140_p9), 0   ;;  %p162_p10 = scmp.lt.s32.totalorder (!%p140_p9), %s513_s16, 3  ;;  %v403_v3 = vld [vmem:[%s608_s1 + $0x10] sm:$0xff] (!%p140_p9)  }
   0xe   : > { %143 = sbr.rel (%p140_p9) target bundleno = 260 (0x104), region = 32  ;;  %348 = vmatprep.subr.bf16.mxu0 (!%p140_p9), %v469_v1  ;;  %356 = vmatprep.mubr.msk.bf16.mxu0 (!%p140_p9), %vm470_vm0, %v469_v1  ;;  %v404_v4 = vld [vmem:[%s608_s1 + $0x18] sm:$0xff] (!%p140_p9)   ;;  %vm207_vm1 = vcmask (!%p140_p9), 523264   ;;  %s159_s10 = sand.u32 (!%p140_p9), 1, %s459_s13   ;;  %v333_v6 = vld [vmem:[%s609_s2] ss:$0 sm:$0xff] (!%p140_p9) }
   0xf   : > { %349 = vmatpush3.bf16.msra.mxu0 (!%p140_p9), %v401_v0  ;;  %s331_s11 = sshll.u32 (!%p140_p9), %s159_s10, 2  ;;  %s340_s20 = sshll.u32 (!%p140_p9), %s513_s16, 6  ;;  %vm252_vm2 = vcmask (!%p140_p9), 257024  }
  0x10   : > { %350 = vmatprep.subr.bf16.mxu0 (!%p140_p9), %v469_v1  ;;  %s161_s24 = scalar_lea.vmem (!%p140_p9), [#allocation2], %s331_s11  ;;  %s471_s30 = smov (!%p140_p9), [#allocation2]  }
  0x11   : > { %s268_s25 = sshll.u32 (!%p140_p9), %s161_s24, 4  ;;  %s567_s25 = int_to_ptr.vmem [resolvable:$true] %s268_s25 }
  0x12   : > { %s405_s29 = scalar_lea.vmem (!%p140_p9), %s567_s25, 64 }
  0x13   : > { %351 = vmatpush3.bf16.msra.mxu0 (!%p140_p9), %v402_v2  ;;  %p406_p11 = scmp.ne.s32.totalorder (!%p140_p9), %s567_s25, %s405_s29 }
  0x14   : > { %352 = vmatprep.subr.bf16.mxu0 (!%p140_p9), %v469_v1 }
  0x15   : > { %s163_s28 = scalar_select %p162_p10, %s513_s16, 3 }
  0x16   : > { %s255_s16 = scalar_lea.sflag [#allocation3], %s159_s10  ;;  %p407_p12 = pnand %p406_p11, %p530_p5 }
  0x17   : > { %s332_s4 = sshll.u32 %s163_s28, 2  ;;  %353 = vmatpush3.bf16.msra.mxu0 %v403_v3  ;;  %s565_s28 = scalar_lea.hbm %s610_s3, %s340_s20 }
  0x18   : > { %354 = vmatprep.subr.bf16.mxu0 %v469_v1  ;;  %s165_s9 = scalar_lea.vmem %s607_s0, %s332_s4  ;;  %p408_p13 = pneg %p407_p12 }
  0x19   : > { %v167_v5 = vld [vmem:[%s165_s9] sm:$0xf]  ;;  %s409_s4 = sshll.u32 %s471_s30, 4  ;;  %s410_s4 = int_to_ptr.vmem [resolvable:$false] %s409_s4 }
  0x1a   : > { %s411_s5 = scalar_lea.vmem %s410_s4, 128  ;;  %p412_p0 = scmp.lt.s32.totalorder %s567_s25, %s410_s4 }
  0x1b   : > { %355 = vmatpush3.bf16.msra.mxu0 %v404_v4  ;;  %p413_p1 = scmp.lt.s32.totalorder %s411_s5, %s405_s29 }
  0x1d   : > { %p414_p2 = por %p413_p1, %p412_p0 }
  0x1e   : > { %357 = vmatmul.mubr.msk.bf16.vlgmr.msra.gmra.mrb[0].mxu0 %vm207_vm1, %v167_v5 }
  0x1f   : > { %p415_p3 = pnand %p414_p2, %p408_p13 }
  0xf1   : > { %v245_v7 = vpop.f32.mrb[0].mxu0 }
  0xf2   : > { %v246_v8 = vadd.f32 %v333_v6, %v245_v7  ;;  %v358_v9 = vpop.f32.mrb[1].mxu0 }
  0xf3   : > { %v248_v10 = vpop.f32.mrb[2].mxu0 }
  0xf4   : > { %v251_v11 = vpack.c.bf16 %v246_v8, %v246_v8  ;;  %v359_v12 = vpop.f32.mrb[3].mxu0 }
  0xf6   : > { %253 = vst.msk [vmem:[%s161_s24] sm:$0xf] %vm252_vm2, %v251_v11 }
  0xf7   : > { %418 = shalt.err (!%p415_p3)
}
  0xf8   : > { %s419_s6 = scalar_lea.hbm %s565_s28, 64  ;;  %s423_s9 = scalar_lea.hbm %s610_s3, 256 }
  0xf9   : > { %p420_p4 = scmp.ne.s32.totalorder %s565_s28, %s419_s6  ;;  %p424_p9 = scmp.lt.u32.totalorder %s565_s28, %s610_s3 }
  0xfa   : > { %p425_p10 = scmp.lt.u32.totalorder %s423_s9, %s419_s6  ;;  %p427_p12 = scmp.lt.u32.totalorder %s419_s6, %s565_s28 }
  0xfb   : > { %p421_p7 = pnand %p420_p4, %p530_p5 }
  0xfc   : > { %p426_p11 = por %p425_p10, %p424_p9 }
  0xfd   : > { %p422_p8 = pneg %p421_p7 }
  0xfe   : > { %p428_p13 = por %p427_p12, %p426_p11 }
 0x100   : > { %p429_p0 = pnand %p428_p13, %p422_p8 }
 0x102   : > { %432 = shalt.err (!%p429_p0)
}
 0x103   : > { %360 = dma.vmem_to_hbm [thread:$0]  (%p530_p5), %s567_s25, 64, %s565_s28, %s255_s16  }
 0x104 PF: > { %p366_p1 = scmp.ge.s32.totalorder %s467_s15, 2  ;;  %s280_s17 = sand.u32 1, %s455_s12  }
 0x105   : > { %s281_s19 = scalar_lea.sflag [#allocation3], %s280_s17 }
 0x106   : > { %p363_p2 = pnand %p366_p1, %p534_p6 }
 0x108   : > { %450 = dma.done.wait (!%p363_p2), %s281_s19, 64  }
 0x109   : > { %452 = vsyncadd (!%p363_p2), %s281_s19, 4294967232  ;;  %p13_p3 = scmp.ge.s32.totalorder %s517_s18, 6   ;;  %s613_s12 = smov %s459_s13 }
 0x10a   : > { %s614_s13 = smov %s463_s14  ;;  %s615_s14 = smov %s528_s21 }
 0x10b   : > { %s616_s15 = smov %s517_s18  ;;  %15 = sbr.rel (!%p13_p3) target bundleno = 3 (0x3), region = 67 }
 0x112   :  { %286 = vsyncpa [#allocation3], 1 }
 0x113   :  { %288 = vsyncpa [#allocation3 + $0x1], 1 }

</bundles_post_ra>
